<compile_context>
chip_gen: v7x
topology: tpu7x:2x2x1
jax: 0.10.0
libtpu: 0.0.40
codegen_flags: <defaults>
</compile_context>

<pallas_src>
import functools

import jax
import jax.numpy as jnp
from jax.experimental import pallas as pl
from jax.experimental.pallas import tpu as pltpu

_MiB = 1024 * 1024


def _round_up(x, m):
    return ((x + m - 1) // m) * m


def _vmem_capacity_bytes():
    """Physical per-core VMEM (128 MiB v5e/v6e, 64 MiB v7x); conservative fallback."""
    try:
        info = pltpu.get_tpu_info()
        for attr in ("vmem_capacity_bytes", "vmem_size_bytes", "vmem_bytes"):
            val = getattr(info, attr, None)
            if val:
                return int(val)
    except Exception:
        pass
    return 64 * _MiB  # most conservative generation (v7x-sized)


def _choose_tiles(B, S, H, itemsize, target_block_bytes, split_for_cores):
    """Pick (tb, ts, th) for the (tb, ts, th) encoded-sequence block.

    Layout constraints: ts must be a multiple of 128 or equal S (attn lane dim,
    and multiple of 8 for enc sublanes); th must be a multiple of 128 or equal H;
    tb is a leading dim everywhere and is unconstrained.
    """
    tb_min = B if B < 8 else 8
    ts_min = S if S < 128 else 128

    # th: full H unless even a minimal (tb, ts) block would blow the budget.
    th = H
    if H > 128:
        max_th = target_block_bytes // max(1, tb_min * ts_min * itemsize)
        if max_th < H:
            th = max(128, (max_th // 128) * 128)

    # ts: as large as the budget allows with a minimal batch tile; prefer a
    # nearby multiple of 128 that divides S so the tail mask is never needed.
    max_ts = target_block_bytes // max(1, tb_min * th * itemsize)
    if S <= 128 or S <= max_ts:
        ts = S
    else:
        cap = max(128, (max_ts // 128) * 128)
        ts = cap
        for cand in range(cap, max(127, cap * 3 // 4 - 1), -128):
            if S % cand == 0:
                ts = cand
                break

    # tb: whole batch if it (roughly) fits the budget, else sized from it.
    if B * ts * th * itemsize <= target_block_bytes * 5 // 4:
        tb = B
    else:
        tb = max(1, min(B, target_block_bytes // max(1, ts * th * itemsize)))

    # Multi-TensorCore chips (v7x): guarantee >= 2 blocks on the parallel axes
    # so megacore sharding has work for both cores.
    if split_for_cores and pl.cdiv(B, tb) * pl.cdiv(H, th) < 2:
        if B >= 2:
            tb = (B + 1) // 2
        elif H >= 256:
            th = max(128, ((H // 2) // 128) * 128)
    return tb, ts, th


def _combiner_kernel(enc_ref, attn_ref, out_ref, acc_ref, *,
                     seq_len, seq_tile, mask_seq):
    # enc_ref  : (TB, TS, TH) VMEM tile of encoded_sequence
    # attn_ref : (TB, 1, TS)  VMEM tile of attention (seq on lanes)
    # out_ref  : (TB, 1, TH)  VMEM tile of the output
    # acc_ref  : (TB, 1, TH)  f32 VMEM accumulator (resident across the s axis)
    #
    # Invariant: out block index is independent of the sequence axis and is only
    # written at the last sequence step, so the sequence axis MUST stay the
    # innermost, "arbitrary" grid axis.
    s_idx = pl.program_id(2)
    last_s = pl.num_programs(2) - 1

    @pl.when(s_idx == 0)
    def _():
        acc_ref[...] = jnp.zeros_like(acc_ref)

    def accumulate(enc, attn):
        # Batched MXU contraction (TB,1,TS) @ (TB,TS,TH) -> (TB,1,TH): consumes
        # the attention tile in its natural (seq-on-lanes) layout and keeps the
        # multiply + sequence reduction off the VPU/XLU (MXU is otherwise idle
        # in this HBM-bound kernel).
        acc_ref[...] += jnp.einsum("bqs,bsh->bqh", attn, enc,
                                   preferred_element_type=jnp.float32)

    if mask_seq:
        @pl.when(s_idx != last_s)
        def _():
            accumulate(enc_ref[...], attn_ref[...])

        @pl.when(s_idx == last_s)
        def _():
            # Only the last sequence block can be partial: zero BOTH operands'
            # padded tails so undefined VMEM contents (NaN/Inf bit patterns)
            # cannot reach the accumulator (0 * NaN == NaN).
            base = s_idx * seq_tile
            pos_enc = base + jax.lax.broadcasted_iota(
                jnp.int32, (1, seq_tile, 1), 1)
            pos_att = base + jax.lax.broadcasted_iota(
                jnp.int32, (1, 1, seq_tile), 2)
            enc = jnp.where(pos_enc < seq_len, enc_ref[...], 0.0)
            attn = jnp.where(pos_att < seq_len, attn_ref[...], 0.0)
            accumulate(enc, attn)
    else:
        accumulate(enc_ref[...], attn_ref[...])

    @pl.when(s_idx == last_s)
    def _():
        out_ref[...] = jnp.tanh(acc_ref[...]).astype(out_ref.dtype)


def combiner_forward(encoded_sequence, attention_values, *, target_block_bytes=None):
    """encoded_sequence: (B, S, H); attention_values: (B, S, 1) or (B, S) -> (B*H,)."""
    B, S, H = encoded_sequence.shape
    enc_dtype = encoded_sequence.dtype
    out_dtype = jnp.result_type(enc_dtype, attention_values.dtype)
    # Attention laid out as (B, 1, S): seq stays on lanes, and both the einsum
    # operand and the (B, 1, H) output need no in-kernel reshape/squeeze.
    attn = attention_values.reshape(B, 1, S).astype(enc_dtype)

    itemsize = jnp.dtype(enc_dtype).itemsize
    out_itemsize = jnp.dtype(out_dtype).itemsize

    # Generation-aware VMEM policy.
    vmem_cap = _vmem_capacity_bytes()
    multi_core = vmem_cap <= 80 * _MiB          # v7x proxy: 64 MiB VMEM, 2 TensorCores
    safe_cap = max(min(int(vmem_cap * 0.7), vmem_cap - 16 * _MiB), 24 * _MiB)
    if target_block_bytes is None:
        target_block_bytes = (9 if multi_core else 14) * _MiB

    tb, ts, th = _choose_tiles(B, S, H, itemsize, target_block_bytes, multi_core)

    def est_vmem(tb_, ts_, th_):
        # Double-buffered blocks with lane/sublane padding, plus the f32
        # accumulator and (if masking) the transient masked-enc temporary.
        enc_blk = tb_ * _round_up(ts_, 8) * _round_up(th_, 128) * itemsize
        attn_blk = tb_ * 8 * _round_up(ts_, 128) * itemsize
        out_blk = tb_ * 8 * _round_up(th_, 128) * out_itemsize
        acc_blk = tb_ * 8 * _round_up(th_, 128) * 4
        total = 2 * (enc_blk + attn_blk + out_blk) + acc_blk
        if S % ts_ != 0:
            total += enc_blk
        return total

    margin = 8 * _MiB
    # Safety valve: shrink tiles if the padded footprint would not fit the cap.
    while est_vmem(tb, ts, th) + margin > safe_cap:
        if ts > 128:
            ts = max(128, ((ts // 2) // 128) * 128)
        elif tb > 1:
            tb = max(1, tb // 2)
        elif th > 128:
            th = max(128, ((th // 2) // 128) * 128)
        else:
            break

    grid = (pl.cdiv(B, tb), pl.cdiv(H, th), pl.cdiv(S, ts))
    mask_seq = (S % ts) != 0
    vmem_limit = int(min(max(est_vmem(tb, ts, th) + margin, 32 * _MiB), safe_cap))

    kernel = functools.partial(_combiner_kernel, seq_len=S, seq_tile=ts,
                               mask_seq=mask_seq)

    out = pl.pallas_call(
        kernel,
        out_shape=jax.ShapeDtypeStruct((B, 1, H), out_dtype),
        grid_spec=pltpu.PrefetchScalarGridSpec(
            num_scalar_prefetch=0,
            grid=grid,
            in_specs=[
                pl.BlockSpec((tb, ts, th), lambda b, h, s: (b, s, h)),
                pl.BlockSpec((tb, 1, ts), lambda b, h, s: (b, 0, s)),
            ],
            out_specs=pl.BlockSpec((tb, 1, th), lambda b, h, s: (b, 0, h)),
            scratch_shapes=[pltpu.VMEM((tb, 1, th), jnp.float32)],
        ),
        compiler_params=pltpu.CompilerParams(
            dimension_semantics=("parallel", "parallel", "arbitrary"),
            vmem_limit_bytes=vmem_limit,
        ),
    )(encoded_sequence, attn)

    # torch .view(-1): flatten to 1-D.
    return out.reshape(-1)


def _reference(encoded_sequence, attention_values):
    B, S, H = encoded_sequence.shape
    attn = attention_values.reshape(B, S, 1).astype(encoded_sequence.dtype)
    return jnp.tanh(jnp.sum(attn * encoded_sequence, axis=1).reshape(-1))


if __name__ == "__main__":
    key = jax.random.PRNGKey(0)
    k1, k2, k3, k4 = jax.random.split(key, 4)

    # Small shapes matching the module interface (batch=2, seq=8, hidden=32).
    B, S, H = 2, 8, 32
    enc = jax.random.normal(k1, (B, S, H), dtype=jnp.float32)
    attn = jax.nn.softmax(jax.random.normal(k2, (B, S, 1), dtype=jnp.float32), axis=1)

    result = jax.block_until_ready(combiner_forward(enc, attn))
    ref = _reference(enc, attn)
    assert result.shape == (B * H,)
    # Tolerance allows for the MXU's default (bf16-pass) f32 matmul precision;
    # real accumulation/masking bugs would show up as O(0.1-1) errors.
    assert jnp.allclose(result, ref, atol=5e-3, rtol=1e-3), "mismatch (small)"

    # Larger case with a tiny forced block budget so batch/hidden/sequence tiling,
    # the multi-step f32 accumulator, a partial trailing batch block and the
    # masked partial last sequence block are all exercised.
    B2, S2, H2 = 10, 320, 256
    enc2 = jax.random.normal(k3, (B2, S2, H2), dtype=jnp.float32)
    attn2 = jax.nn.softmax(jax.random.normal(k4, (B2, S2, 1), dtype=jnp.float32), axis=1)

    result2 = jax.block_until_ready(
        combiner_forward(enc2, attn2, target_block_bytes=256 * 1024))
    ref2 = _reference(enc2, attn2)
    assert result2.shape == (B2 * H2,)
    assert jnp.allclose(result2, ref2, atol=5e-3, rtol=1e-3), "mismatch (tiled)"

    print("KERNEL_OK")
</pallas_src>

<mosaic_0001>
module attributes {stable_mosaic.version = 11 : i64} {
  func.func @_combiner_kernel(%arg0: i32, %arg1: i32, %arg2: i32, %arg3: memref<1x8x32xf32, #tpu.memory_space<vmem>>, %arg4: memref<1x1x8xf32, #tpu.memory_space<vmem>>, %arg5: memref<1x1x32xf32, #tpu.memory_space<vmem>>, %arg6: memref<1x1x32xf32, #tpu.memory_space<vmem>>) attributes {dimension_semantics = [#tpu.dimension_semantics<parallel>, #tpu.dimension_semantics<parallel>, #tpu.dimension_semantics<arbitrary>], iteration_bounds = array<i64: 2, 1, 1>, scalar_prefetch = 0 : i64, scratch_operands = 1 : i64, tpu.core_type = #tpu.core_type<tc>, window_params = [{transform_indices = @transform_0, window_bounds = array<i64: 1, 8, 32>}, {transform_indices = @transform_1, window_bounds = array<i64: 1, 1, 8>}, {transform_indices = @transform_2, window_bounds = array<i64: 1, 1, 32>}]} {
    %c0_i32 = arith.constant 0 : i32
    %0 = arith.cmpi eq, %arg2, %c0_i32 : i32
    %1 = arith.extui %0 : i1 to i32
    %c0_i32_0 = arith.constant 0 : i32
    %2 = arith.cmpi ne, %1, %c0_i32_0 : i32
    scf.if %2 {
      %cst_14 = arith.constant 0.000000e+00 : f32
      %12 = vector.broadcast %cst_14 : f32 to vector<1x1x32xf32>
      %c0_15 = arith.constant 0 : index
      %c0_16 = arith.constant 0 : index
      %c0_17 = arith.constant 0 : index
      %13 = vector.load %arg6[%c0_15, %c0_16, %c0_17] : memref<1x1x32xf32, #tpu.memory_space<vmem>>, vector<1x1x32xf32>
      tpu.vector_store %arg6[%c0_15, %c0_16, %c0_17], %12 {strides = array<i32>} : memref<1x1x32xf32, #tpu.memory_space<vmem>>, vector<1x1x32xf32>,
    } else {
    }
    %c0 = arith.constant 0 : index
    %c0_1 = arith.constant 0 : index
    %c0_2 = arith.constant 0 : index
    %3 = vector.load %arg3[%c0, %c0_1, %c0_2] : memref<1x8x32xf32, #tpu.memory_space<vmem>>, vector<1x8x32xf32>
    %c0_3 = arith.constant 0 : index
    %c0_4 = arith.constant 0 : index
    %c0_5 = arith.constant 0 : index
    %4 = vector.load %arg4[%c0_3, %c0_4, %c0_5] : memref<1x1x8xf32, #tpu.memory_space<vmem>>, vector<1x1x8xf32>
    %c0_6 = arith.constant 0 : index
    %c0_7 = arith.constant 0 : index
    %c0_8 = arith.constant 0 : index
    %5 = vector.load %arg6[%c0_6, %c0_7, %c0_8] : memref<1x1x32xf32, #tpu.memory_space<vmem>>, vector<1x1x32xf32>
    "tpu.trace_start"() <{level = 10 : i32, message = "bqs,bsh->bqh"}> : () -> ()
    %cst = arith.constant dense<0.000000e+00> : vector<1x1x32xf32>
    %6 = tpu.matmul %4, %3, %cst {dimension_numbers = #tpu.dot_dimension_numbers<[2], [1], [1], [2], [0, 0, 0, 1, 1, 2], [0], [0]>} : vector<1x1x8xf32>, vector<1x8x32xf32>, vector<1x1x32xf32> -> vector<1x1x32xf32>
    "tpu.trace_stop"() : () -> ()
    %7 = arith.addf %5, %6 : vector<1x1x32xf32>
    %c0_9 = arith.constant 0 : index
    %c0_10 = arith.constant 0 : index
    %c0_11 = arith.constant 0 : index
    %8 = vector.load %arg6[%c0_9, %c0_10, %c0_11] : memref<1x1x32xf32, #tpu.memory_space<vmem>>, vector<1x1x32xf32>
    tpu.vector_store %arg6[%c0_9, %c0_10, %c0_11], %7 {strides = array<i32>} : memref<1x1x32xf32, #tpu.memory_space<vmem>>, vector<1x1x32xf32>,
    %c0_i32_12 = arith.constant 0 : i32
    %9 = arith.cmpi eq, %arg2, %c0_i32_12 : i32
    %10 = arith.extui %9 : i1 to i32
    %c0_i32_13 = arith.constant 0 : i32
    %11 = arith.cmpi ne, %10, %c0_i32_13 : i32
    scf.if %11 {
      %c0_14 = arith.constant 0 : index
      %c0_15 = arith.constant 0 : index
      %c0_16 = arith.constant 0 : index
      %12 = vector.load %arg6[%c0_14, %c0_15, %c0_16] : memref<1x1x32xf32, #tpu.memory_space<vmem>>, vector<1x1x32xf32>
      %13 = math.tanh %12 : vector<1x1x32xf32>
      %c0_17 = arith.constant 0 : index
      %c0_18 = arith.constant 0 : index
      %c0_19 = arith.constant 0 : index
      %14 = vector.load %arg5[%c0_17, %c0_18, %c0_19] : memref<1x1x32xf32, #tpu.memory_space<vmem>>, vector<1x1x32xf32>
      tpu.vector_store %arg5[%c0_17, %c0_18, %c0_19], %13 {strides = array<i32>} : memref<1x1x32xf32, #tpu.memory_space<vmem>>, vector<1x1x32xf32>,
    } else {
    }
    return
  }
  func.func @transform_0(%arg0: i32, %arg1: i32, %arg2: i32) -> (i32, i32, i32) {
    %c0_i32 = arith.constant 0 : i32
    return %arg0, %arg2, %arg1 : i32, i32, i32
  }
  func.func @transform_1(%arg0: i32, %arg1: i32, %arg2: i32) -> (i32, i32, i32) {
    %c0_i32 = arith.constant 0 : i32
    %c0_i32_0 = arith.constant 0 : i32
    return %arg0, %c0_i32, %arg2 : i32, i32, i32
  }
  func.func @transform_2(%arg0: i32, %arg1: i32, %arg2: i32) -> (i32, i32, i32) {
    %c0_i32 = arith.constant 0 : i32
    %c0_i32_0 = arith.constant 0 : i32
    return %arg0, %c0_i32, %arg1 : i32, i32, i32
  }
}

</mosaic_0001>

<bundles_post_ra>
// kernel: tpu_custom_call.1
= control target key start
LH: loop header
LB: loop body
LE: loop exit
PB: predicated region body
PF: predicated region fallthrough
CT: control target
= control target key end

     0   :  { %7 = vsyncpa [#allocation4], 0  ;;  %s807_s0 = inlined_call_operand.hbm [shape: f32[2,8,32], index: 0, kind: input, shape index: {}]   ;;  %s808_s1 = inlined_call_operand.vmem [shape: f32[2,1,8], index: 1, kind: input, shape index: {}]   ;;  %s809_s2 = inlined_call_operand.hbm [shape: f32[2,1,32], index: 2, kind: output, shape index: {}]  }
   0x1   :  { %9 = vsyncpa [#allocation4 + $0x1], 0 }
   0x2   :  { %10 = vsyncpa [#allocation5], 0 }
   0x3   :  { %12 = vsyncpa [#allocation5 + $0x1], 0  ;;  %s626_s9 = smov 0   ;;  %s628_s10 = smov 0  }
   0x4   :  { %s630_s11 = smov 0   ;;  %s632_s12 = smov 0  }
   0x5   :  { %s634_s13 = smov 0   ;;  %s636_s14 = smov 0  }
   0x6 LB: > { %s408_s15 = sadd.s32 4294967295, %s605_s14   ;;  %s409_s16 = sadd.s32 4294967294, %s605_s14   ;;  %s605_s14 = sphi %s636_s14, %s18_s14   ;;  %s601_s13 = sphi %s634_s13, %s825_s13   ;;  %s597_s12 = sphi %s632_s12, %s824_s12   ;;  %s593_s11 = sphi %s630_s11, %s823_s11   ;;  %s589_s10 = sphi %s628_s10, %s822_s10   ;;  %s585_s9 = sphi %s626_s9, %s821_s9  }
   0x7   : > { %s37_s17 = sadd.s32 1, %s601_s13  ;;  %s48_s18 = sadd.s32 1, %s593_s11 }
   0x8   : > { %p39_p0 = scmp.ge.s32.totalorder %s37_s17, 2  ;;  %p55_p1 = scmp.ne.s32.totalorder %s593_s11, %s589_s10 }
   0x9   : > { %p56_p2 = scmp.eq.s32.totalorder %s605_s14, 0  ;;  %p61_p3 = scmp.ne.s32.totalorder %s589_s10, %s585_s9 }
   0xa   : > { %s827_s17 = smov (%p39_p0, %s37_s17), 0  ;;  %p62_p5 = scmp.eq.s32.totalorder %s408_s15, 0 }
   0xb   : > { %p667_p4 = por %p56_p2, %p55_p1  ;;  %s41_s20 = ssub.s32 %s601_s13, %s827_s17 }
   0xc   : > { %p115_p6 = scmp.eq.s32.totalorder %s408_s15, 1  ;;  %p46_p7 = scmp.eq.s32.totalorder %s41_s20, 0 }
   0xd   : > { %p673_p8 = por %p62_p5, %p61_p3  ;;  %p121_p10 = scmp.eq.s32.totalorder %s409_s16, 1 }
   0xe   : > { %p677_p9 = por %p115_p6, %p55_p1  ;;  %p439_p13 = scmp.lt.s32.totalorder %s605_s14, 2 }
   0xf   : > { %s682_s23 = scalar_select %p46_p7, %s593_s11, %s48_s18  }
  0x10   : > { %s813_s22 = scalar_select %p677_p9, 1, 0 }
  0x11   : > { %p684_p11 = por %p121_p10, %p61_p3  ;;  %s141_s25 = sand.u32 1, %s593_s11  }
  0x12   : > { %s412_s26 = sshll.u32 %s141_s25, 3  ;;  %s413_s27 = sshll.u32 %s601_s13, 7 }
  0x13   : > { %s814_s24 = scalar_select %p684_p11, 1, 0 }
  0x14   : > { %s695_s30 = scalar_lea.hbm %s807_s0, %s413_s27  ;;  %s145_s3 = scalar_lea.vmem [#allocation3], %s412_s26 }
  0x15   : > { %s154_s4 = sshll.u32 %s145_s3, 4  ;;  %p701_p0 = pnand %p439_p13, %p667_p4  ;;  %s697_s4 = int_to_ptr.vmem [resolvable:$true] %s154_s4 }
  0x16   : > { %s142_s6 = scalar_lea.sflag [#allocation4], %s141_s25  ;;  %s493_s7 = scalar_lea.hbm %s695_s30, 128 }
  0x17   : > { %p494_p3 = scmp.ne.s32.totalorder %s695_s30, %s493_s7  ;;  %p495_p5 = pneg %p701_p0 }
  0x18   : > { %s498_s16 = scalar_lea.hbm %s807_s0, 256  ;;  %p499_p4 = scmp.lt.u32.totalorder %s695_s30, %s807_s0 }
  0x19   : > { %p496_p6 = pnand %p495_p5, %p494_p3  ;;  %p500_p10 = scmp.lt.u32.totalorder %s498_s16, %s493_s7 }
  0x1a   : > { %p502_p12 = scmp.lt.u32.totalorder %s493_s7, %s695_s30 }
  0x1b   : > { %p497_p7 = pneg %p496_p6  ;;  %p501_p13 = por %p500_p10, %p499_p4 }
  0x1d   : > { %p503_p1 = por %p502_p12, %p501_p13 }
  0x1f   : > { %p504_p2 = pnand %p503_p1, %p497_p7 }
  0x21   : > { %507 = shalt.err (!%p504_p2)
}
  0x22   : > { %s508_s20 = scalar_lea.vmem %s697_s4, 128  ;;  %s607_s25 = smov [#allocation3]  }
  0x23   : > { %p509_p3 = scmp.ne.s32.totalorder %s697_s4, %s508_s20  ;;  %s513_s26 = sshll.u32 %s607_s25, 4  ;;  %s514_s26 = int_to_ptr.vmem [resolvable:$false] %s513_s26 }
  0x24   : > { %s515_s27 = scalar_lea.vmem %s514_s26, 256  ;;  %p516_p9 = scmp.lt.s32.totalorder %s697_s4, %s514_s26 }
  0x25   : > { %p511_p6 = pnand %p509_p3, %p495_p5  ;;  %p517_p4 = scmp.lt.s32.totalorder %s515_s27, %s508_s20 }
  0x27   : > { %p512_p11 = pneg %p511_p6  ;;  %p518_p10 = por %p517_p4, %p516_p9 }
  0x29   : > { %p519_p12 = pnand %p518_p10, %p512_p11 }
  0x2b   : > { %522 = shalt.err (!%p519_p12)
}
  0x2c   : > { %434 = dma.hbm_to_vmem [thread:$0]  (!%p701_p0), %s695_s30, 128, %s697_s4, %s142_s6  }
  0x2d   : > { %p816_p1 = scmp.lt.s32.totalorder %s605_s14, 3  ;;  %p817_p2 = scmp.ge.s32.totalorder %s605_s14, 1 }
  0x2f   : > { %p169_p5 = pnand %p817_p2, %p816_p1 }
  0x30   : > { %s737_s28 = sand.u32 (!%p169_p5), 1, %s589_s10  }
  0x31   : > { %172 = sbr.rel (%p169_p5) target bundleno = 310 (0x136), region = 28  ;;  %s415_s29 = sshll.u32 (!%p169_p5), %s737_s28, 3 }
  0x32   : > { %s175_s3 = scalar_lea.sflag (!%p169_p5), [#allocation4], %s737_s28  ;;  %s178_s7 = scalar_lea.vmem (!%p169_p5), [#allocation3], %s415_s29 }
  0x38   : > { %576 = dma.done.wait (%p673_p8), %s175_s3, 128  }
  0x39   : > { %578 = vsyncadd (%p673_p8), %s175_s3, 4294967168  ;;  %vm214_vm0 = vcmask 253952   ;;  %p204_p9 = scmp.lt.s32.totalorder %s597_s12, 1  ;;  %v608_v0 = vmov 0.0   ;;  %vm609_vm1 = vmmov 0   ;;  %vm219_vm2 = vcmask 64512  }
  0x3a   : > { %215 = vst.msk [vmem:[#allocation2] sm:$0x1] %vm214_vm0, %v608_v0  ;;  %422 = vmatprep.subr.mxu0 %v608_v0  ;;  %424 = vmatprep.mubr.msk.f32.mxu0 %vm609_vm1, %v608_v0  ;;  %v216_v1 = vld [vmem:[%s178_s7] sm:$0xff]  ;;  %s417_s21 = sshll.u32 %s597_s12, 4  ;;  %s203_s8 = scalar_lea.vmem [#allocation6], %s737_s28 }
  0x3b   : > { %s205_s30 = scalar_select %p204_p9, %s597_s12, 1  ;;  %423 = vmatpush3.msra.mxu0 %v216_v1 }
  0x3c   : > { %s316_s15 = sshll.u32 %s203_s8, 4  ;;  %s757_s19 = scalar_lea.hbm %s809_s2, %s417_s21  ;;  %s759_s15 = int_to_ptr.vmem [resolvable:$true] %s316_s15 }
  0x3d   : > { %s209_s6 = scalar_lea.vmem %s808_s1, %s205_s30  ;;  %s303_s20 = scalar_lea.sflag [#allocation5], %s737_s28 }
  0x3e   : > { %v217_v2 = vld [vmem:[%s209_s6] sm:$0x1]  ;;  %s523_s25 = scalar_lea.vmem %s759_s15, 16  ;;  %p818_p11 = scmp.ne.s32.totalorder %s813_s22, 0 }
  0x3f   : > { %425 = vmatmul.mubr.msk.f32.vlgmr.msra.gmra.mrb[0].mxu0 %vm219_vm2, %v217_v2  ;;  %p524_p8 = scmp.ne.s32.totalorder %s759_s15, %s523_s25  ;;  %s610_s12 = smov [#allocation6]  }
  0x40   : > { %s527_s26 = sshll.u32 %s610_s12, 4  ;;  %s528_s26 = int_to_ptr.vmem [resolvable:$false] %s527_s26 }
  0x41   : > { %v218_v3 = vld [vmem:[#allocation2] sm:$0x1]  ;;  %p525_p0 = pnand %p524_p8, %p818_p11  ;;  %s529_s27 = scalar_lea.vmem %s528_s26, 32 }
  0x42   : > { %p530_p13 = scmp.lt.s32.totalorder %s759_s15, %s528_s26  ;;  %p531_p3 = scmp.lt.s32.totalorder %s529_s27, %s523_s25 }
  0x43   : > { %p526_p7 = pneg %p525_p0 }
  0x44   : > { %p532_p6 = por %p531_p3, %p530_p13 }
  0x46   : > { %p533_p4 = pnand %p532_p6, %p526_p7 }
 0x112   : > { %v289_v4 = vpop.f32.mrb[0].mxu0 }
 0x113   : > { %v293_v5 = vadd.f32 %v289_v4, %v218_v3  ;;  %v426_v6 = vpop.f32.mrb[1].mxu0 }
 0x115   : > { %295 = vst.msk [vmem:[#allocation2] sm:$0x1] %vm214_vm0, %v293_v5 }
 0x11c   : > { %v299_v7 = vld [vmem:[#allocation2] sm:$0x1] }
 0x11d   : > { %491 = vtanh.f32 %v299_v7 }
 0x127   : > { %v492_v8 = vpop.eup %491 }
 0x128   : > { %301 = vst.msk [vmem:[%s203_s8] sm:$0x1] %vm214_vm0, %v492_v8 }
 0x129   : > { %536 = shalt.err (!%p533_p4)
}
 0x12a   : > { %s537_s28 = scalar_lea.hbm %s757_s19, 16  ;;  %s541_s7 = scalar_lea.hbm %s809_s2, 32 }
 0x12b   : > { %p538_p10 = scmp.ne.s32.totalorder %s757_s19, %s537_s28  ;;  %p542_p2 = scmp.lt.u32.totalorder %s757_s19, %s809_s2 }
 0x12c   : > { %p543_p5 = scmp.lt.u32.totalorder %s541_s7, %s537_s28  ;;  %p545_p8 = scmp.lt.u32.totalorder %s537_s28, %s757_s19 }
 0x12d   : > { %p539_p12 = pnand %p538_p10, %p818_p11 }
 0x12e   : > { %p544_p9 = por %p543_p5, %p542_p2 }
 0x12f   : > { %p540_p1 = pneg %p539_p12 }
 0x130   : > { %p546_p0 = por %p545_p8, %p544_p9 }
 0x132   : > { %p547_p7 = pnand %p546_p0, %p540_p1 }
 0x134   : > { %550 = shalt.err (!%p547_p7)
}
 0x135   : > { %429 = dma.vmem_to_hbm [thread:$0]  (%p818_p11), %s759_s15, 16, %s757_s19, %s303_s20  }
 0x136 PF: > { %s328_s5 = sand.u32 1, %s585_s9   ;;  %p819_p13 = scmp.ne.s32.totalorder %s814_s24, 0 }
 0x137   : > { %p820_p3 = scmp.ge.s32.totalorder %s605_s14, 2  ;;  %s329_s6 = scalar_lea.sflag [#allocation5], %s328_s5 }
 0x139   : > { %p436_p6 = pnand %p820_p3, %p819_p13 }
 0x13b   : > { %580 = dma.done.wait (!%p436_p6), %s329_s6, 16  }
 0x13c   : > { %582 = vsyncadd (!%p436_p6), %s329_s6, 4294967280  ;;  %s18_s14 = sadd.s32 1, %s605_s14   ;;  %s821_s9 = smov %s589_s10 }
 0x13d   : > { %p15_p4 = scmp.ge.s32.totalorder %s18_s14, 4   ;;  %s822_s10 = smov %s593_s11 }
 0x13e   : > { %s823_s11 = smov %s682_s23  ;;  %s824_s12 = smov %s601_s13 }
 0x13f   : > { %s825_s13 = smov %s827_s17  ;;  %17 = sbr.rel (!%p15_p4) target bundleno = 6 (0x6), region = 84 }
 0x146   :  { %333 = vsyncpa [#allocation4], 1 }
 0x147   :  { %335 = vsyncpa [#allocation4 + $0x1], 1 }
 0x148   :  { %336 = vsyncpa [#allocation5], 1 }
 0x149   :  { %338 = vsyncpa [#allocation5 + $0x1], 1 }

</bundles_post_ra>
